<compile_context>
chip_gen: v5e
topology: v5e:2x2
jax: 0.10.0
libtpu: 0.0.40
codegen_flags: <defaults>
</compile_context>

<pallas_src>
import functools
import numpy as np
import jax
import jax.numpy as jnp
from jax import lax
from jax.experimental import pallas as pl
from jax.experimental.pallas import tpu as pltpu


# ----------------------------------------------------------------------------
# Pallas kernel 1: fused bidirectional LSTM layer.
# Grid = time; h/c for both directions carried in VMEM scratch.  The backward
# direction reads/writes with reversed block indices (no flips).
# ----------------------------------------------------------------------------
def _bilstm_kernel(xgf_ref, xgb_ref, whhf_ref, whhb_ref,
                   hf_out_ref, hb_out_ref,
                   hf_sc, cf_sc, hb_sc, cb_sc):
    t = pl.program_id(0)

    @pl.when(t == 0)
    def _():
        hf_sc[...] = jnp.zeros_like(hf_sc)
        cf_sc[...] = jnp.zeros_like(cf_sc)
        hb_sc[...] = jnp.zeros_like(hb_sc)
        cb_sc[...] = jnp.zeros_like(cb_sc)

    Hd = hf_sc.shape[1]

    def cell(xg, whh_ref, h_sc, c_sc):
        # xg already contains x @ W_ih + bias (hoisted out of the recurrence).
        gates = xg + jnp.dot(h_sc[...], whh_ref[...],
                             preferred_element_type=jnp.float32)   # (B, 4H)
        i = jax.nn.sigmoid(gates[:, 0 * Hd:1 * Hd])
        f = jax.nn.sigmoid(gates[:, 1 * Hd:2 * Hd])
        g = jnp.tanh(gates[:, 2 * Hd:3 * Hd])
        o = jax.nn.sigmoid(gates[:, 3 * Hd:4 * Hd])
        c_new = f * c_sc[...] + i * g
        h_new = o * jnp.tanh(c_new)
        c_sc[...] = c_new
        h_sc[...] = h_new
        return h_new

    hf_out_ref[0] = cell(xgf_ref[0], whhf_ref, hf_sc, cf_sc)
    hb_out_ref[0] = cell(xgb_ref[0], whhb_ref, hb_sc, cb_sc)


def bilstm_layer(xg_f, xg_b, w_hh_f, w_hh_b):
    """Fused bidirectional LSTM layer.

    xg_f, xg_b : (T, B, 4H) precomputed input gates (x @ W_ih + b) per direction.
    w_hh_f/b   : (H, 4H)    recurrent weights.
    Returns (h_f, h_b), each (T, B, H); h_b[s] is the backward hidden state at
    original time index s (PyTorch bidirectional-LSTM output convention).
    """
    T, B, G = xg_f.shape
    Hd = w_hh_f.shape[0]
    assert G == 4 * Hd

    return pl.pallas_call(
        _bilstm_kernel,
        out_shape=(jax.ShapeDtypeStruct((T, B, Hd), jnp.float32),
                   jax.ShapeDtypeStruct((T, B, Hd), jnp.float32)),
        grid_spec=pltpu.PrefetchScalarGridSpec(
            num_scalar_prefetch=0,
            grid=(T,),
            in_specs=[
                pl.BlockSpec((1, B, G), lambda t: (t, 0, 0)),          # fwd x-gates
                pl.BlockSpec((1, B, G), lambda t: (T - 1 - t, 0, 0)),  # bwd x-gates (reversed DMA)
                pl.BlockSpec((Hd, G), lambda t: (0, 0)),               # W_hh fwd (grid-invariant)
                pl.BlockSpec((Hd, G), lambda t: (0, 0)),               # W_hh bwd (grid-invariant)
            ],
            out_specs=[
                pl.BlockSpec((1, B, Hd), lambda t: (t, 0, 0)),          # fwd h
                pl.BlockSpec((1, B, Hd), lambda t: (T - 1 - t, 0, 0)),  # bwd h (reversed write)
            ],
            scratch_shapes=[pltpu.VMEM((B, Hd), jnp.float32)] * 4,      # h_f, c_f, h_b, c_b
        ),
        compiler_params=pltpu.CompilerParams(
            dimension_semantics=("arbitrary",)),   # sequential recurrence over time
    )(xg_f, xg_b, w_hh_f, w_hh_b)


# ----------------------------------------------------------------------------
# Pallas kernel 2: tanh-attention over time + relu + fc1 + fc (fused head),
# time-major inputs, gridded over batch.  The fwd/bwd halves are consumed
# separately with row-split weights (no HBM concat needed).
# ----------------------------------------------------------------------------
def _attn_head_kernel(hf_ref, hb_ref, wf_ref, wb_ref, w1f_ref, w1b_ref,
                      b1_ref, w2_ref, b2_ref, out_ref):
    T, bb, Hd = hf_ref.shape
    hf = hf_ref[...]                                  # (T, bb, H)
    hb = hb_ref[...]

    # attention scores as an MXU matmul: (T*bb, H) @ (H, 1)
    mf = jnp.tanh(hf).reshape(T * bb, Hd)
    mb = jnp.tanh(hb).reshape(T * bb, Hd)
    scores = (jnp.dot(mf, wf_ref[...], preferred_element_type=jnp.float32)
              + jnp.dot(mb, wb_ref[...], preferred_element_type=jnp.float32))
    scores = scores.reshape(T, bb, 1)

    # softmax over time (leading axis -> cheap cross-vreg reduction)
    m = jnp.max(scores, axis=0, keepdims=True)
    e = jnp.exp(scores - m)
    alpha = e / jnp.sum(e, axis=0, keepdims=True)     # (T, bb, 1)

    # weighted sum over time, relu applied per-half (== relu of the concat)
    of = jnp.maximum(jnp.sum(hf * alpha, axis=0), 0.0)   # (bb, H)
    ob = jnp.maximum(jnp.sum(hb * alpha, axis=0), 0.0)   # (bb, H)

    z = (jnp.dot(of, w1f_ref[...], preferred_element_type=jnp.float32)
         + jnp.dot(ob, w1b_ref[...], preferred_element_type=jnp.float32)
         + b1_ref[...])                                  # (bb, H2)
    out_ref[...] = (jnp.dot(z, w2_ref[...], preferred_element_type=jnp.float32)
                    + b2_ref[...])                       # (bb, C)


def attn_head(h_f, h_b, w, w1, b1, w2, b2, bb=None):
    T, B, Hd = h_f.shape
    H2 = w1.shape[1]
    C = w2.shape[1]
    if bb is None:
        bb = B                                   # whole batch in one block at toy size

    wf = w[:Hd].reshape(Hd, 1)
    wb = w[Hd:].reshape(Hd, 1)
    w1f = w1[:Hd]
    w1b = w1[Hd:]

    return pl.pallas_call(
        _attn_head_kernel,
        out_shape=jax.ShapeDtypeStruct((B, C), jnp.float32),
        grid_spec=pltpu.PrefetchScalarGridSpec(
            num_scalar_prefetch=0,
            grid=(pl.cdiv(B, bb),),
            in_specs=[
                pl.BlockSpec((T, bb, Hd), lambda i: (0, i, 0)),
                pl.BlockSpec((T, bb, Hd), lambda i: (0, i, 0)),
                pl.BlockSpec((Hd, 1), lambda i: (0, 0)),
                pl.BlockSpec((Hd, 1), lambda i: (0, 0)),
                pl.BlockSpec((Hd, H2), lambda i: (0, 0)),
                pl.BlockSpec((Hd, H2), lambda i: (0, 0)),
                pl.BlockSpec((1, H2), lambda i: (0, 0)),
                pl.BlockSpec((H2, C), lambda i: (0, 0)),
                pl.BlockSpec((1, C), lambda i: (0, 0)),
            ],
            out_specs=pl.BlockSpec((bb, C), lambda i: (i, 0)),
        ),
        compiler_params=pltpu.CompilerParams(
            dimension_semantics=("parallel",)),
    )(h_f, h_b, wf, wb, w1f, w1b, b1.reshape(1, H2), w2, b2.reshape(1, C))


# ----------------------------------------------------------------------------
# Full model forward
# ----------------------------------------------------------------------------
def _input_gates_bidir(parts, w_ih_f, b_f, w_ih_b, b_b):
    """Both directions' input projections with one matmul per input part.

    parts: list of (T, B, F_i) tensors (the previous layer's split halves, so
    they are never concatenated in HBM); weights are row-split per part and
    column-concatenated across directions: (F_i, 8H) matmuls.
    Returns (xg_f, xg_b), each (T, B, 4H).
    """
    T, B = parts[0].shape[:2]
    G = w_ih_f.shape[1]
    acc = None
    off = 0
    for p in parts:
        F = p.shape[-1]
        w_cat = jnp.concatenate([w_ih_f[off:off + F], w_ih_b[off:off + F]],
                                axis=1)                       # (F, 8H), tiny
        contrib = p.reshape(T * B, F) @ w_cat
        acc = contrib if acc is None else acc + contrib
        off += F
    xg_f = (acc[:, :G] + b_f).reshape(T, B, G)
    xg_b = (acc[:, G:] + b_b).reshape(T, B, G)
    return xg_f, xg_b


def model_forward(tokens, params, num_layers):
    # time-major embedding gather: (T, B, E)  (no later transposes needed)
    # TODO(synk): the embedding lookup itself stays a plain-JAX gather.
    emb = params["embedding"][tokens.T]

    h_f = h_b = None
    layer_in = [emb]
    for layer in range(num_layers):
        w_ih_f, w_hh_f, b_f = params["lstm"][(layer, 0)]
        w_ih_b, w_hh_b, b_b = params["lstm"][(layer, 1)]
        # hoisted input projection: one big (T*B, F) x (F, 8H) matmul per part.
        xg_f, xg_b = _input_gates_bidir(layer_in, w_ih_f, b_f, w_ih_b, b_b)
        h_f, h_b = bilstm_layer(xg_f, xg_b, w_hh_f, w_hh_b)
        layer_in = [h_f, h_b]      # next layer consumes the split halves
        # (inter-layer dropout is identity in eval mode)

    return attn_head(h_f, h_b, params["w"],
                     params["fc1_w"], params["fc1_b"],
                     params["fc_w"], params["fc_b"])


# ----------------------------------------------------------------------------
# Pure-JAX reference (for sanity checking the kernels)
# ----------------------------------------------------------------------------
def _ref_lstm_dir(x_tbe, w_ih, w_hh, bias):
    T, B, E = x_tbe.shape
    Hd = w_hh.shape[0]

    def step(carry, x_t):
        h, c = carry
        gates = x_t @ w_ih + h @ w_hh + bias
        i = jax.nn.sigmoid(gates[:, :Hd])
        f = jax.nn.sigmoid(gates[:, Hd:2 * Hd])
        g = jnp.tanh(gates[:, 2 * Hd:3 * Hd])
        o = jax.nn.sigmoid(gates[:, 3 * Hd:])
        c = f * c + i * g
        h = o * jnp.tanh(c)
        return (h, c), h

    _, hs = lax.scan(step, (jnp.zeros((B, Hd)), jnp.zeros((B, Hd))), x_tbe)
    return hs


def model_forward_ref(tokens, params, num_layers):
    emb = params["embedding"][tokens]
    x = jnp.transpose(emb, (1, 0, 2))
    for layer in range(num_layers):
        outs = []
        for direction in range(2):
            w_ih, w_hh, bias = params["lstm"][(layer, direction)]
            xin = x if direction == 0 else jnp.flip(x, axis=0)
            hout = _ref_lstm_dir(xin, w_ih, w_hh, bias)
            if direction == 1:
                hout = jnp.flip(hout, axis=0)
            outs.append(hout)
        x = jnp.concatenate(outs, axis=-1)
    Hmat = jnp.transpose(x, (1, 0, 2))                # (B, T, 2H)
    M = jnp.tanh(Hmat)
    alpha = jax.nn.softmax(jnp.einsum("btd,d->bt", M, params["w"]), axis=1)
    out = jnp.sum(Hmat * alpha[:, :, None], axis=1)
    out = jax.nn.relu(out)
    out = out @ params["fc1_w"] + params["fc1_b"]
    out = out @ params["fc_w"] + params["fc_b"]
    return out


# ----------------------------------------------------------------------------
# Deterministic parameter construction
# ----------------------------------------------------------------------------
def make_params(key, n_vocab, embed, hidden, num_layers, hidden2, num_classes):
    keys = iter(jax.random.split(key, 64))
    p = {}
    emb_tbl = 0.1 * jax.random.normal(next(keys), (n_vocab, embed), jnp.float32)
    emb_tbl = emb_tbl.at[n_vocab - 1].set(0.0)        # padding_idx row = 0
    p["embedding"] = emb_tbl

    p["lstm"] = {}
    for layer in range(num_layers):
        e_in = embed if layer == 0 else 2 * hidden
        for direction in range(2):
            w_ih = 0.1 * jax.random.normal(next(keys), (e_in, 4 * hidden), jnp.float32)
            w_hh = 0.1 * jax.random.normal(next(keys), (hidden, 4 * hidden), jnp.float32)
            bias = 0.1 * jax.random.normal(next(keys), (4 * hidden,), jnp.float32)
            p["lstm"][(layer, direction)] = (w_ih, w_hh, bias)

    p["w"] = 0.1 * jax.random.normal(next(keys), (2 * hidden,), jnp.float32)
    p["fc1_w"] = 0.1 * jax.random.normal(next(keys), (2 * hidden, hidden2), jnp.float32)
    p["fc1_b"] = 0.1 * jax.random.normal(next(keys), (hidden2,), jnp.float32)
    p["fc_w"] = 0.1 * jax.random.normal(next(keys), (hidden2, num_classes), jnp.float32)
    p["fc_b"] = 0.1 * jax.random.normal(next(keys), (num_classes,), jnp.float32)
    return p


if __name__ == "__main__":
    # small config consistent with the module
    B, T = 2, 8
    n_vocab, embed = 50, 32
    hidden, num_layers = 32, 2
    hidden2, num_classes = 16, 4

    key = jax.random.PRNGKey(0)
    k_tok, k_par = jax.random.split(key)
    tokens = jax.random.randint(k_tok, (B, T), 0, n_vocab, dtype=jnp.int32)
    params = make_params(k_par, n_vocab, embed, hidden, num_layers,
                         hidden2, num_classes)

    fwd = jax.jit(functools.partial(model_forward, num_layers=num_layers))
    out = jax.block_until_ready(fwd(tokens, params))

    ref = jax.block_until_ready(model_forward_ref(tokens, params, num_layers))
    np.testing.assert_allclose(np.asarray(out), np.asarray(ref),
                               rtol=1e-3, atol=1e-3)

    assert out.shape == (B, num_classes)
    print("KERNEL_OK")
</pallas_src>

<mosaic_0001>
module attributes {stable_mosaic.version = 11 : i64} {
  func.func @_attn_head_kernel(%arg0: i32, %arg1: memref<8x2x32xf32, #tpu.memory_space<vmem>>, %arg2: memref<8x2x32xf32, #tpu.memory_space<vmem>>, %arg3: memref<32x1xf32, #tpu.memory_space<vmem>>, %arg4: memref<32x1xf32, #tpu.memory_space<vmem>>, %arg5: memref<32x16xf32, #tpu.memory_space<vmem>>, %arg6: memref<32x16xf32, #tpu.memory_space<vmem>>, %arg7: memref<1x16xf32, #tpu.memory_space<vmem>>, %arg8: memref<16x4xf32, #tpu.memory_space<vmem>>, %arg9: memref<1x4xf32, #tpu.memory_space<vmem>>, %arg10: memref<2x4xf32, #tpu.memory_space<vmem>>) attributes {dimension_semantics = [#tpu.dimension_semantics<parallel>], iteration_bounds = array<i64: 1>, scalar_prefetch = 0 : i64, scratch_operands = 0 : i64, tpu.core_type = #tpu.core_type<tc>, window_params = [{transform_indices = @transform_0, window_bounds = array<i64: 8, 2, 32>}, {transform_indices = @transform_1, window_bounds = array<i64: 8, 2, 32>}, {pipeline_mode = #tpu.pipeline_mode<synchronous>, transform_indices = @transform_2, window_bounds = array<i64: 32, 1>}, {pipeline_mode = #tpu.pipeline_mode<synchronous>, transform_indices = @transform_3, window_bounds = array<i64: 32, 1>}, {pipeline_mode = #tpu.pipeline_mode<synchronous>, transform_indices = @transform_4, window_bounds = array<i64: 32, 16>}, {pipeline_mode = #tpu.pipeline_mode<synchronous>, transform_indices = @transform_5, window_bounds = array<i64: 32, 16>}, {pipeline_mode = #tpu.pipeline_mode<synchronous>, transform_indices = @transform_6, window_bounds = array<i64: 1, 16>}, {pipeline_mode = #tpu.pipeline_mode<synchronous>, transform_indices = @transform_7, window_bounds = array<i64: 16, 4>}, {pipeline_mode = #tpu.pipeline_mode<synchronous>, transform_indices = @transform_8, window_bounds = array<i64: 1, 4>}, {transform_indices = @transform_9, window_bounds = array<i64: 2, 4>}]} {
    %c0 = arith.constant 0 : index
    %c0_0 = arith.constant 0 : index
    %c0_1 = arith.constant 0 : index
    %0 = vector.load %arg1[%c0, %c0_0, %c0_1] : memref<8x2x32xf32, #tpu.memory_space<vmem>>, vector<8x2x32xf32>
    %c0_2 = arith.constant 0 : index
    %c0_3 = arith.constant 0 : index
    %c0_4 = arith.constant 0 : index
    %1 = vector.load %arg2[%c0_2, %c0_3, %c0_4] : memref<8x2x32xf32, #tpu.memory_space<vmem>>, vector<8x2x32xf32>
    %2 = math.tanh %0 : vector<8x2x32xf32>
    %3 = vector.shape_cast %2 : vector<8x2x32xf32> to vector<16x32xf32>
    %4 = math.tanh %1 : vector<8x2x32xf32>
    %5 = vector.shape_cast %4 : vector<8x2x32xf32> to vector<16x32xf32>
    %c0_5 = arith.constant 0 : index
    %c0_6 = arith.constant 0 : index
    %6 = vector.load %arg3[%c0_5, %c0_6] : memref<32x1xf32, #tpu.memory_space<vmem>>, vector<32x1xf32>
    %cst = arith.constant dense<0.000000e+00> : vector<16x1xf32>
    %7 = tpu.matmul %3, %6, %cst {dimension_numbers = #tpu.dot_dimension_numbers<[1], [0], [0], [1], [0, 0, 1, 1], [], []>} : vector<16x32xf32>, vector<32x1xf32>, vector<16x1xf32> -> vector<16x1xf32>
    %c0_7 = arith.constant 0 : index
    %c0_8 = arith.constant 0 : index
    %8 = vector.load %arg4[%c0_7, %c0_8] : memref<32x1xf32, #tpu.memory_space<vmem>>, vector<32x1xf32>
    %cst_9 = arith.constant dense<0.000000e+00> : vector<16x1xf32>
    %9 = tpu.matmul %5, %8, %cst_9 {dimension_numbers = #tpu.dot_dimension_numbers<[1], [0], [0], [1], [0, 0, 1, 1], [], []>} : vector<16x32xf32>, vector<32x1xf32>, vector<16x1xf32> -> vector<16x1xf32>
    %10 = arith.addf %7, %9 : vector<16x1xf32>
    %11 = vector.shape_cast %10 : vector<16x1xf32> to vector<8x2x1xf32>
    %cst_10 = arith.constant dense<0xFF800000> : vector<2x1xf32>
    %12 = vector.multi_reduction <maximumf>, %11, %cst_10 [0] : vector<8x2x1xf32> to vector<2x1xf32>
    %13 = vector.shape_cast %12 : vector<2x1xf32> to vector<1x2x1xf32>
    %14 = vector.broadcast %13 : vector<1x2x1xf32> to vector<8x2x1xf32>
    %15 = arith.subf %11, %14 : vector<8x2x1xf32>
    %16 = math.exp %15 : vector<8x2x1xf32>
    %cst_11 = arith.constant dense<0.000000e+00> : vector<2x1xf32>
    %17 = vector.multi_reduction <add>, %16, %cst_11 [0] : vector<8x2x1xf32> to vector<2x1xf32>
    %18 = vector.shape_cast %17 : vector<2x1xf32> to vector<1x2x1xf32>
    %19 = vector.broadcast %18 : vector<1x2x1xf32> to vector<8x2x1xf32>
    %20 = arith.divf %16, %19 : vector<8x2x1xf32>
    %21 = vector.broadcast %20 : vector<8x2x1xf32> to vector<8x2x32xf32>
    %22 = arith.mulf %0, %21 : vector<8x2x32xf32>
    %cst_12 = arith.constant dense<0.000000e+00> : vector<2x32xf32>
    %23 = vector.multi_reduction <add>, %22, %cst_12 [0] : vector<8x2x32xf32> to vector<2x32xf32>
    %cst_13 = arith.constant 0.000000e+00 : f32
    %24 = vector.broadcast %cst_13 : f32 to vector<2x32xf32>
    %25 = arith.maximumf %23, %24 : vector<2x32xf32>
    %26 = vector.broadcast %20 : vector<8x2x1xf32> to vector<8x2x32xf32>
    %27 = arith.mulf %1, %26 : vector<8x2x32xf32>
    %cst_14 = arith.constant dense<0.000000e+00> : vector<2x32xf32>
    %28 = vector.multi_reduction <add>, %27, %cst_14 [0] : vector<8x2x32xf32> to vector<2x32xf32>
    %cst_15 = arith.constant 0.000000e+00 : f32
    %29 = vector.broadcast %cst_15 : f32 to vector<2x32xf32>
    %30 = arith.maximumf %28, %29 : vector<2x32xf32>
    %c0_16 = arith.constant 0 : index
    %c0_17 = arith.constant 0 : index
    %31 = vector.load %arg5[%c0_16, %c0_17] : memref<32x16xf32, #tpu.memory_space<vmem>>, vector<32x16xf32>
    %cst_18 = arith.constant dense<0.000000e+00> : vector<2x16xf32>
    %32 = tpu.matmul %25, %31, %cst_18 {dimension_numbers = #tpu.dot_dimension_numbers<[1], [0], [0], [1], [0, 0, 1, 1], [], []>} : vector<2x32xf32>, vector<32x16xf32>, vector<2x16xf32> -> vector<2x16xf32>
    %c0_19 = arith.constant 0 : index
    %c0_20 = arith.constant 0 : index
    %33 = vector.load %arg6[%c0_19, %c0_20] : memref<32x16xf32, #tpu.memory_space<vmem>>, vector<32x16xf32>
    %cst_21 = arith.constant dense<0.000000e+00> : vector<2x16xf32>
    %34 = tpu.matmul %30, %33, %cst_21 {dimension_numbers = #tpu.dot_dimension_numbers<[1], [0], [0], [1], [0, 0, 1, 1], [], []>} : vector<2x32xf32>, vector<32x16xf32>, vector<2x16xf32> -> vector<2x16xf32>
    %35 = arith.addf %32, %34 : vector<2x16xf32>
    %c0_22 = arith.constant 0 : index
    %c0_23 = arith.constant 0 : index
    %36 = vector.load %arg7[%c0_22, %c0_23] : memref<1x16xf32, #tpu.memory_space<vmem>>, vector<1x16xf32>
    %37 = vector.broadcast %36 : vector<1x16xf32> to vector<2x16xf32>
    %38 = arith.addf %35, %37 : vector<2x16xf32>
    %c0_24 = arith.constant 0 : index
    %c0_25 = arith.constant 0 : index
    %39 = vector.load %arg8[%c0_24, %c0_25] : memref<16x4xf32, #tpu.memory_space<vmem>>, vector<16x4xf32>
    %cst_26 = arith.constant dense<0.000000e+00> : vector<2x4xf32>
    %40 = tpu.matmul %38, %39, %cst_26 {dimension_numbers = #tpu.dot_dimension_numbers<[1], [0], [0], [1], [0, 0, 1, 1], [], []>} : vector<2x16xf32>, vector<16x4xf32>, vector<2x4xf32> -> vector<2x4xf32>
    %c0_27 = arith.constant 0 : index
    %c0_28 = arith.constant 0 : index
    %41 = vector.load %arg9[%c0_27, %c0_28] : memref<1x4xf32, #tpu.memory_space<vmem>>, vector<1x4xf32>
    %42 = vector.broadcast %41 : vector<1x4xf32> to vector<2x4xf32>
    %43 = arith.addf %40, %42 : vector<2x4xf32>
    %c0_29 = arith.constant 0 : index
    %c0_30 = arith.constant 0 : index
    %44 = vector.load %arg10[%c0_29, %c0_30] : memref<2x4xf32, #tpu.memory_space<vmem>>, vector<2x4xf32>
    tpu.vector_store %arg10[%c0_29, %c0_30], %43 {strides = array<i32>} : memref<2x4xf32, #tpu.memory_space<vmem>>, vector<2x4xf32>,
    return
  }
  func.func @transform_0(%arg0: i32) -> (i32, i32, i32) {
    %c0_i32 = arith.constant 0 : i32
    %c0_i32_0 = arith.constant 0 : i32
    %c0_i32_1 = arith.constant 0 : i32
    return %c0_i32, %arg0, %c0_i32_0 : i32, i32, i32
  }
  func.func @transform_1(%arg0: i32) -> (i32, i32, i32) {
    %c0_i32 = arith.constant 0 : i32
    %c0_i32_0 = arith.constant 0 : i32
    %c0_i32_1 = arith.constant 0 : i32
    return %c0_i32, %arg0, %c0_i32_0 : i32, i32, i32
  }
  func.func @transform_2(%arg0: i32) -> (i32, i32) {
    %c0_i32 = arith.constant 0 : i32
    %c0_i32_0 = arith.constant 0 : i32
    %c0_i32_1 = arith.constant 0 : i32
    return %c0_i32, %c0_i32_0 : i32, i32
  }
  func.func @transform_3(%arg0: i32) -> (i32, i32) {
    %c0_i32 = arith.constant 0 : i32
    %c0_i32_0 = arith.constant 0 : i32
    %c0_i32_1 = arith.constant 0 : i32
    return %c0_i32, %c0_i32_0 : i32, i32
  }
  func.func @transform_4(%arg0: i32) -> (i32, i32) {
    %c0_i32 = arith.constant 0 : i32
    %c0_i32_0 = arith.constant 0 : i32
    %c0_i32_1 = arith.constant 0 : i32
    return %c0_i32, %c0_i32_0 : i32, i32
  }
  func.func @transform_5(%arg0: i32) -> (i32, i32) {
    %c0_i32 = arith.constant 0 : i32
    %c0_i32_0 = arith.constant 0 : i32
    %c0_i32_1 = arith.constant 0 : i32
    return %c0_i32, %c0_i32_0 : i32, i32
  }
  func.func @transform_6(%arg0: i32) -> (i32, i32) {
    %c0_i32 = arith.constant 0 : i32
    %c0_i32_0 = arith.constant 0 : i32
    %c0_i32_1 = arith.constant 0 : i32
    return %c0_i32, %c0_i32_0 : i32, i32
  }
  func.func @transform_7(%arg0: i32) -> (i32, i32) {
    %c0_i32 = arith.constant 0 : i32
    %c0_i32_0 = arith.constant 0 : i32
    %c0_i32_1 = arith.constant 0 : i32
    return %c0_i32, %c0_i32_0 : i32, i32
  }
  func.func @transform_8(%arg0: i32) -> (i32, i32) {
    %c0_i32 = arith.constant 0 : i32
    %c0_i32_0 = arith.constant 0 : i32
    %c0_i32_1 = arith.constant 0 : i32
    return %c0_i32, %c0_i32_0 : i32, i32
  }
  func.func @transform_9(%arg0: i32) -> (i32, i32) {
    %c0_i32 = arith.constant 0 : i32
    %c0_i32_0 = arith.constant 0 : i32
    return %arg0, %c0_i32 : i32, i32
  }
}

module attributes {stable_mosaic.version = 11 : i64} {
  func.func @_bilstm_kernel(%arg0: i32, %arg1: memref<1x2x128xf32, #tpu.memory_space<vmem>>, %arg2: memref<1x2x128xf32, #tpu.memory_space<vmem>>, %arg3: memref<32x128xf32, #tpu.memory_space<vmem>>, %arg4: memref<32x128xf32, #tpu.memory_space<vmem>>, %arg5: memref<1x2x32xf32, #tpu.memory_space<vmem>>, %arg6: memref<1x2x32xf32, #tpu.memory_space<vmem>>, %arg7: memref<2x32xf32, #tpu.memory_space<vmem>>, %arg8: memref<2x32xf32, #tpu.memory_space<vmem>>, %arg9: memref<2x32xf32, #tpu.memory_space<vmem>>, %arg10: memref<2x32xf32, #tpu.memory_space<vmem>>) attributes {dimension_semantics = [#tpu.dimension_semantics<arbitrary>], iteration_bounds = array<i64: 8>, scalar_prefetch = 0 : i64, scratch_operands = 4 : i64, tpu.core_type = #tpu.core_type<tc>, window_params = [{transform_indices = @transform_0, window_bounds = array<i64: 1, 2, 128>}, {transform_indices = @transform_1, window_bounds = array<i64: 1, 2, 128>}, {pipeline_mode = #tpu.pipeline_mode<synchronous>, transform_indices = @transform_2, window_bounds = array<i64: 32, 128>}, {pipeline_mode = #tpu.pipeline_mode<synchronous>, transform_indices = @transform_3, window_bounds = array<i64: 32, 128>}, {transform_indices = @transform_4, window_bounds = array<i64: 1, 2, 32>}, {transform_indices = @transform_5, window_bounds = array<i64: 1, 2, 32>}]} {
    %c0_i32 = arith.constant 0 : i32
    %0 = arith.cmpi eq, %arg0, %c0_i32 : i32
    %1 = arith.extui %0 : i1 to i32
    %c0_i32_0 = arith.constant 0 : i32
    %2 = arith.cmpi ne, %1, %c0_i32_0 : i32
    scf.if %2 {
      %cst_39 = arith.constant 0.000000e+00 : f32
      %77 = vector.broadcast %cst_39 : f32 to vector<2x32xf32>
      %c0_40 = arith.constant 0 : index
      %c0_41 = arith.constant 0 : index
      %78 = vector.load %arg7[%c0_40, %c0_41] : memref<2x32xf32, #tpu.memory_space<vmem>>, vector<2x32xf32>
      tpu.vector_store %arg7[%c0_40, %c0_41], %77 {strides = array<i32>} : memref<2x32xf32, #tpu.memory_space<vmem>>, vector<2x32xf32>,
      %cst_42 = arith.constant 0.000000e+00 : f32
      %79 = vector.broadcast %cst_42 : f32 to vector<2x32xf32>
      %c0_43 = arith.constant 0 : index
      %c0_44 = arith.constant 0 : index
      %80 = vector.load %arg8[%c0_43, %c0_44] : memref<2x32xf32, #tpu.memory_space<vmem>>, vector<2x32xf32>
      tpu.vector_store %arg8[%c0_43, %c0_44], %79 {strides = array<i32>} : memref<2x32xf32, #tpu.memory_space<vmem>>, vector<2x32xf32>,
      %cst_45 = arith.constant 0.000000e+00 : f32
      %81 = vector.broadcast %cst_45 : f32 to vector<2x32xf32>
      %c0_46 = arith.constant 0 : index
      %c0_47 = arith.constant 0 : index
      %82 = vector.load %arg9[%c0_46, %c0_47] : memref<2x32xf32, #tpu.memory_space<vmem>>, vector<2x32xf32>
      tpu.vector_store %arg9[%c0_46, %c0_47], %81 {strides = array<i32>} : memref<2x32xf32, #tpu.memory_space<vmem>>, vector<2x32xf32>,
      %cst_48 = arith.constant 0.000000e+00 : f32
      %83 = vector.broadcast %cst_48 : f32 to vector<2x32xf32>
      %c0_49 = arith.constant 0 : index
      %c0_50 = arith.constant 0 : index
      %84 = vector.load %arg10[%c0_49, %c0_50] : memref<2x32xf32, #tpu.memory_space<vmem>>, vector<2x32xf32>
      tpu.vector_store %arg10[%c0_49, %c0_50], %83 {strides = array<i32>} : memref<2x32xf32, #tpu.memory_space<vmem>>, vector<2x32xf32>,
    } else {
    }
    %c0 = arith.constant 0 : index
    %c0_1 = arith.constant 0 : index
    %c0_2 = arith.constant 0 : index
    %3 = vector.load %arg1[%c0, %c0_1, %c0_2] : memref<1x2x128xf32, #tpu.memory_space<vmem>>, vector<1x2x128xf32>
    %4 = vector.shape_cast %3 : vector<1x2x128xf32> to vector<2x128xf32>
    %c0_3 = arith.constant 0 : index
    %c0_4 = arith.constant 0 : index
    %5 = vector.load %arg7[%c0_3, %c0_4] : memref<2x32xf32, #tpu.memory_space<vmem>>, vector<2x32xf32>
    %c0_5 = arith.constant 0 : index
    %c0_6 = arith.constant 0 : index
    %6 = vector.load %arg3[%c0_5, %c0_6] : memref<32x128xf32, #tpu.memory_space<vmem>>, vector<32x128xf32>
    %cst = arith.constant dense<0.000000e+00> : vector<2x128xf32>
    %7 = tpu.matmul %5, %6, %cst {dimension_numbers = #tpu.dot_dimension_numbers<[1], [0], [0], [1], [0, 0, 1, 1], [], []>} : vector<2x32xf32>, vector<32x128xf32>, vector<2x128xf32> -> vector<2x128xf32>
    %8 = arith.addf %4, %7 : vector<2x128xf32>
    %9 = vector.extract_strided_slice %8 {offsets = [0, 0], sizes = [2, 32], strides = [1, 1]} : vector<2x128xf32> to vector<2x32xf32>
    %10 = arith.negf %9 : vector<2x32xf32>
    %11 = math.exp %10 : vector<2x32xf32>
    %cst_7 = arith.constant 1.000000e+00 : f32
    %12 = vector.broadcast %cst_7 : f32 to vector<2x32xf32>
    %13 = arith.addf %12, %11 : vector<2x32xf32>
    %14 = arith.divf %12, %13 : vector<2x32xf32>
    %15 = vector.extract_strided_slice %8 {offsets = [0, 32], sizes = [2, 32], strides = [1, 1]} : vector<2x128xf32> to vector<2x32xf32>
    %16 = arith.negf %15 : vector<2x32xf32>
    %17 = math.exp %16 : vector<2x32xf32>
    %cst_8 = arith.constant 1.000000e+00 : f32
    %18 = vector.broadcast %cst_8 : f32 to vector<2x32xf32>
    %19 = arith.addf %18, %17 : vector<2x32xf32>
    %20 = arith.divf %18, %19 : vector<2x32xf32>
    %21 = vector.extract_strided_slice %8 {offsets = [0, 64], sizes = [2, 32], strides = [1, 1]} : vector<2x128xf32> to vector<2x32xf32>
    %22 = math.tanh %21 : vector<2x32xf32>
    %23 = vector.extract_strided_slice %8 {offsets = [0, 96], sizes = [2, 32], strides = [1, 1]} : vector<2x128xf32> to vector<2x32xf32>
    %24 = arith.negf %23 : vector<2x32xf32>
    %25 = math.exp %24 : vector<2x32xf32>
    %cst_9 = arith.constant 1.000000e+00 : f32
    %26 = vector.broadcast %cst_9 : f32 to vector<2x32xf32>
    %27 = arith.addf %26, %25 : vector<2x32xf32>
    %28 = arith.divf %26, %27 : vector<2x32xf32>
    %c0_10 = arith.constant 0 : index
    %c0_11 = arith.constant 0 : index
    %29 = vector.load %arg8[%c0_10, %c0_11] : memref<2x32xf32, #tpu.memory_space<vmem>>, vector<2x32xf32>
    %30 = arith.mulf %20, %29 : vector<2x32xf32>
    %31 = arith.mulf %14, %22 : vector<2x32xf32>
    %32 = arith.addf %30, %31 : vector<2x32xf32>
    %33 = math.tanh %32 : vector<2x32xf32>
    %34 = arith.mulf %28, %33 : vector<2x32xf32>
    %c0_12 = arith.constant 0 : index
    %c0_13 = arith.constant 0 : index
    %35 = vector.load %arg8[%c0_12, %c0_13] : memref<2x32xf32, #tpu.memory_space<vmem>>, vector<2x32xf32>
    tpu.vector_store %arg8[%c0_12, %c0_13], %32 {strides = array<i32>} : memref<2x32xf32, #tpu.memory_space<vmem>>, vector<2x32xf32>,
    %c0_14 = arith.constant 0 : index
    %c0_15 = arith.constant 0 : index
    %36 = vector.load %arg7[%c0_14, %c0_15] : memref<2x32xf32, #tpu.memory_space<vmem>>, vector<2x32xf32>
    tpu.vector_store %arg7[%c0_14, %c0_15], %34 {strides = array<i32>} : memref<2x32xf32, #tpu.memory_space<vmem>>, vector<2x32xf32>,
    %c0_16 = arith.constant 0 : index
    %c0_17 = arith.constant 0 : index
    %c0_18 = arith.constant 0 : index
    %37 = vector.load %arg5[%c0_16, %c0_17, %c0_18] : memref<1x2x32xf32, #tpu.memory_space<vmem>>, vector<1x2x32xf32>
    %38 = vector.shape_cast %37 : vector<1x2x32xf32> to vector<2x32xf32>
    %39 = vector.shape_cast %34 : vector<2x32xf32> to vector<1x2x32xf32>
    tpu.vector_store %arg5[%c0_16, %c0_17, %c0_18], %39 {strides = array<i32>} : memref<1x2x32xf32, #tpu.memory_space<vmem>>, vector<1x2x32xf32>,
    %c0_19 = arith.constant 0 : index
    %c0_20 = arith.constant 0 : index
    %c0_21 = arith.constant 0 : index
    %40 = vector.load %arg2[%c0_19, %c0_20, %c0_21] : memref<1x2x128xf32, #tpu.memory_space<vmem>>, vector<1x2x128xf32>
    %41 = vector.shape_cast %40 : vector<1x2x128xf32> to vector<2x128xf32>
    %c0_22 = arith.constant 0 : index
    %c0_23 = arith.constant 0 : index
    %42 = vector.load %arg9[%c0_22, %c0_23] : memref<2x32xf32, #tpu.memory_space<vmem>>, vector<2x32xf32>
    %c0_24 = arith.constant 0 : index
    %c0_25 = arith.constant 0 : index
    %43 = vector.load %arg4[%c0_24, %c0_25] : memref<32x128xf32, #tpu.memory_space<vmem>>, vector<32x128xf32>
    %cst_26 = arith.constant dense<0.000000e+00> : vector<2x128xf32>
    %44 = tpu.matmul %42, %43, %cst_26 {dimension_numbers = #tpu.dot_dimension_numbers<[1], [0], [0], [1], [0, 0, 1, 1], [], []>} : vector<2x32xf32>, vector<32x128xf32>, vector<2x128xf32> -> vector<2x128xf32>
    %45 = arith.addf %41, %44 : vector<2x128xf32>
    %46 = vector.extract_strided_slice %45 {offsets = [0, 0], sizes = [2, 32], strides = [1, 1]} : vector<2x128xf32> to vector<2x32xf32>
    %47 = arith.negf %46 : vector<2x32xf32>
    %48 = math.exp %47 : vector<2x32xf32>
    %cst_27 = arith.constant 1.000000e+00 : f32
    %49 = vector.broadcast %cst_27 : f32 to vector<2x32xf32>
    %50 = arith.addf %49, %48 : vector<2x32xf32>
    %51 = arith.divf %49, %50 : vector<2x32xf32>
    %52 = vector.extract_strided_slice %45 {offsets = [0, 32], sizes = [2, 32], strides = [1, 1]} : vector<2x128xf32> to vector<2x32xf32>
    %53 = arith.negf %52 : vector<2x32xf32>
    %54 = math.exp %53 : vector<2x32xf32>
    %cst_28 = arith.constant 1.000000e+00 : f32
    %55 = vector.broadcast %cst_28 : f32 to vector<2x32xf32>
    %56 = arith.addf %55, %54 : vector<2x32xf32>
    %57 = arith.divf %55, %56 : vector<2x32xf32>
    %58 = vector.extract_strided_slice %45 {offsets = [0, 64], sizes = [2, 32], strides = [1, 1]} : vector<2x128xf32> to vector<2x32xf32>
    %59 = math.tanh %58 : vector<2x32xf32>
    %60 = vector.extract_strided_slice %45 {offsets = [0, 96], sizes = [2, 32], strides = [1, 1]} : vector<2x128xf32> to vector<2x32xf32>
    %61 = arith.negf %60 : vector<2x32xf32>
    %62 = math.exp %61 : vector<2x32xf32>
    %cst_29 = arith.constant 1.000000e+00 : f32
    %63 = vector.broadcast %cst_29 : f32 to vector<2x32xf32>
    %64 = arith.addf %63, %62 : vector<2x32xf32>
    %65 = arith.divf %63, %64 : vector<2x32xf32>
    %c0_30 = arith.constant 0 : index
    %c0_31 = arith.constant 0 : index
    %66 = vector.load %arg10[%c0_30, %c0_31] : memref<2x32xf32, #tpu.memory_space<vmem>>, vector<2x32xf32>
    %67 = arith.mulf %57, %66 : vector<2x32xf32>
    %68 = arith.mulf %51, %59 : vector<2x32xf32>
    %69 = arith.addf %67, %68 : vector<2x32xf32>
    %70 = math.tanh %69 : vector<2x32xf32>
    %71 = arith.mulf %65, %70 : vector<2x32xf32>
    %c0_32 = arith.constant 0 : index
    %c0_33 = arith.constant 0 : index
    %72 = vector.load %arg10[%c0_32, %c0_33] : memref<2x32xf32, #tpu.memory_space<vmem>>, vector<2x32xf32>
    tpu.vector_store %arg10[%c0_32, %c0_33], %69 {strides = array<i32>} : memref<2x32xf32, #tpu.memory_space<vmem>>, vector<2x32xf32>,
    %c0_34 = arith.constant 0 : index
    %c0_35 = arith.constant 0 : index
    %73 = vector.load %arg9[%c0_34, %c0_35] : memref<2x32xf32, #tpu.memory_space<vmem>>, vector<2x32xf32>
    tpu.vector_store %arg9[%c0_34, %c0_35], %71 {strides = array<i32>} : memref<2x32xf32, #tpu.memory_space<vmem>>, vector<2x32xf32>,
    %c0_36 = arith.constant 0 : index
    %c0_37 = arith.constant 0 : index
    %c0_38 = arith.constant 0 : index
    %74 = vector.load %arg6[%c0_36, %c0_37, %c0_38] : memref<1x2x32xf32, #tpu.memory_space<vmem>>, vector<1x2x32xf32>
    %75 = vector.shape_cast %74 : vector<1x2x32xf32> to vector<2x32xf32>
    %76 = vector.shape_cast %71 : vector<2x32xf32> to vector<1x2x32xf32>
    tpu.vector_store %arg6[%c0_36, %c0_37, %c0_38], %76 {strides = array<i32>} : memref<1x2x32xf32, #tpu.memory_space<vmem>>, vector<1x2x32xf32>,
    return
  }
  func.func @transform_0(%arg0: i32) -> (i32, i32, i32) {
    %c0_i32 = arith.constant 0 : i32
    %c0_i32_0 = arith.constant 0 : i32
    %c0_i32_1 = arith.constant 0 : i32
    return %arg0, %c0_i32, %c0_i32_0 : i32, i32, i32
  }
  func.func @transform_1(%arg0: i32) -> (i32, i32, i32) {
    %c7_i32 = arith.constant 7 : i32
    %0 = arith.subi %c7_i32, %arg0 : i32
    %c0_i32 = arith.constant 0 : i32
    %c0_i32_0 = arith.constant 0 : i32
    %c0_i32_1 = arith.constant 0 : i32
    return %0, %c0_i32, %c0_i32_0 : i32, i32, i32
  }
  func.func @transform_2(%arg0: i32) -> (i32, i32) {
    %c0_i32 = arith.constant 0 : i32
    %c0_i32_0 = arith.constant 0 : i32
    %c0_i32_1 = arith.constant 0 : i32
    return %c0_i32, %c0_i32_0 : i32, i32
  }
  func.func @transform_3(%arg0: i32) -> (i32, i32) {
    %c0_i32 = arith.constant 0 : i32
    %c0_i32_0 = arith.constant 0 : i32
    %c0_i32_1 = arith.constant 0 : i32
    return %c0_i32, %c0_i32_0 : i32, i32
  }
  func.func @transform_4(%arg0: i32) -> (i32, i32, i32) {
    %c0_i32 = arith.constant 0 : i32
    %c0_i32_0 = arith.constant 0 : i32
    %c0_i32_1 = arith.constant 0 : i32
    return %arg0, %c0_i32, %c0_i32_0 : i32, i32, i32
  }
  func.func @transform_5(%arg0: i32) -> (i32, i32, i32) {
    %c7_i32 = arith.constant 7 : i32
    %0 = arith.subi %c7_i32, %arg0 : i32
    %c0_i32 = arith.constant 0 : i32
    %c0_i32_0 = arith.constant 0 : i32
    %c0_i32_1 = arith.constant 0 : i32
    return %0, %c0_i32, %c0_i32_0 : i32, i32, i32
  }
}

</mosaic_0001>

<bundles_post_ra>
// kernel: model_forward.3
= control target key start
LH: loop header
LB: loop body
LE: loop exit
PB: predicated region body
PF: predicated region fallthrough
CT: control target
= control target key end

     0   :  { %s622_s18 = smov 0   ;;  %s697_s0 = inlined_call_operand.vmem [shape: f32[8,2,128], index: 0, kind: input, shape index: {}]   ;;  %s698_s1 = inlined_call_operand.vmem [shape: f32[8,2,128], index: 1, kind: input, shape index: {}]   ;;  %s699_s2 = inlined_call_operand.vmem [shape: f32[32,128], index: 2, kind: input, shape index: {}]   ;;  %s700_s3 = inlined_call_operand.vmem [shape: f32[32,128], index: 3, kind: input, shape index: {}]   ;;  %s701_s4 = inlined_call_operand.vmem [shape: f32[8,2,32], index: 4, kind: output, shape index: {0}]   ;;  %s702_s5 = inlined_call_operand.vmem [shape: f32[8,2,32], index: 5, kind: output, shape index: {1}]  }
   0x1 LB: > { %s536_s19 = sadd.s32 4294967295, %s586_s18   ;;  %p540_p0 = scmp.ge.s32.totalorder %s586_s18, 1  ;;  %s586_s18 = sphi %s622_s18, %s16_s18  }
   0x2   : > { %p204_p1 = scmp.lt.s32.totalorder %s586_s18, 9 }
   0x4   : > { %p205_p2 = pnand %p540_p0, %p204_p1 }
   0x5   : > { %p240_p3 = scmp.lt.s32.totalorder (!%p205_p2), %s536_s19, 7  ;;  %s244_s20 = ssub.s32 (!%p205_p2), 7, %s536_s19 }
   0x6   : > { %208 = sbr.rel (%p205_p2) target bundleno = 616 (0x268), region = 36  ;;  %p245_p4 = scmp.lt.s32.totalorder (!%p205_p2), %s244_s20, 7 }
   0x7   : > { %p545_p5 = scmp.ne.s32.totalorder (!%p205_p2), %s536_s19, 0 }
   0xb   : > { %s241_s21 = scalar_select %p240_p3, %s536_s19, 7 }
   0xc   : > { %s704_s20 = smov (!%p245_p4, %s244_s20), 7  ;;  %263 = sbr.rel (%p545_p5) target bundleno = 22 (0x16), region = 40 }
   0xd   : > { %s541_s22 = sshll.u32 %s241_s21, 1  ;;  %s542_s26 = sshll.u32 %s704_s20, 1 }
   0xe   : > { %s633_s25 = scalar_lea.vmem %s697_s0, %s541_s22  ;;  %s638_s29 = scalar_lea.vmem %s698_s1, %s542_s26 }
   0xf   : > { %s643_s7 = scalar_lea.vmem %s701_s4, %s541_s22  ;;  %s648_s10 = scalar_lea.vmem %s702_s5, %s542_s26 }
  0x11   : > { %vm264_vm0 = vcmask 254976   ;;  %v588_v0 = vmov 0.0  }
  0x12   : > { %265 = vst.msk [vmem:[#allocation2] sm:$0x3] %vm264_vm0, %v588_v0 }
  0x13   : > { %266 = vst.msk [vmem:[#allocation3] sm:$0x3] %vm264_vm0, %v588_v0 }
  0x14   : > { %267 = vst.msk [vmem:[#allocation4] sm:$0x3] %vm264_vm0, %v588_v0 }
  0x15   : > { %268 = vst.msk [vmem:[#allocation5] sm:$0x3] %vm264_vm0, %v588_v0 }
  0x16 PF: > { %v274_v1 = vld [vmem:[%s699_s2 + $0x18] sm:$0xff]  ;;  %v273_v2 = vld [vmem:[%s699_s2 + $0x10] sm:$0xff]  ;;  %v272_v4 = vld [vmem:[%s699_s2 + $0x8] sm:$0xff]  ;;  %s589_s27 = smov 32   ;;  %vm275_vm1 = vcmask 261120   ;;  %s590_s6 = smov 64  }
  0x17   : > { %291 = vmatpush.msra.mxu0 %v274_v1  ;;  %v359_v3 = vld [vmem:[%s700_s3 + $0x18] sm:$0xff]  ;;  %v358_v5 = vld [vmem:[%s700_s3 + $0x10] sm:$0xff]  ;;  %v357_v6 = vld [vmem:[%s700_s3 + $0x8] sm:$0xff]  ;;  %vm346_vm10 = vcmask 254976  }
  0x18   : > { %375 = vmatpush.msra.mxu1 %v359_v3  ;;  %v271_v8 = vld [vmem:[%s699_s2] sm:$0xff] }
  0x19   : > { %292 = vmatpush.msra.mxu0 %v273_v2  ;;  %v270_v9 = vld [vmem:[#allocation2] sm:$0x3] }
  0x1a   : > { %v320_v7 = vld [vmem:[#allocation3] sm:$0x3]  ;;  %376 = vmatpush.msra.mxu1 %v358_v5  ;;  %v269_v13 = vld [vmem:[%s633_s25] sm:$0x3]  ;;  %s591_s25 = smov 96  }
  0x1b   : > { %322 = vrot.lane.b32.xlu1 %v320_v7, %s589_s27  ;;  %293 = vmatpush.msra.mxu0 %v272_v4  ;;  %v356_v10 = vld [vmem:[%s700_s3] sm:$0xff] }
  0x1c   : > { %377 = vmatpush.msra.mxu1 %v357_v6  ;;  %v355_v11 = vld [vmem:[#allocation4] sm:$0x3]  ;;  %v404_v12 = vld [vmem:[#allocation5] sm:$0x3]  ;;  %v354_v16 = vld [vmem:[%s638_s29] sm:$0x3] }
  0x1d   : > { %294 = vmatpush.msra.mxu0 %v271_v8 }
  0x1e   : > { %546 = vmatmul.msk.f32.vlgmr.msra.gmra.mxu0 %vm275_vm1, %v270_v9  ;;  %378 = vmatpush.msra.mxu1 %v356_v10 }
  0x1f   : > { %548 = vmatmul.msk.f32.vlgmr.msra.gmra.mxu1 %vm275_vm1, %v355_v11 }
  0x23   : > { %406 = vrot.lane.b32.xlu1 %v404_v12, %s589_s27 }
  0x8d   : > { %v323_v51 = vpop.permute.xlu1 %322 }
  0x95   : > { %v407_v55 = vpop.permute.xlu1 %406 }
  0x9b   : > { %v296_v14 = vpop.f32.mrf.mxu0 }
  0x9c   : > { %v299_v15 = vadd.f32 %v296_v14, %v269_v13  ;;  %v380_v17 = vpop.f32.mrf.mxu1 }
  0x9d   : > { %v383_v18 = vadd.f32 %v380_v17, %v354_v16 }
  0x9e   : > { %564 = vtanh.f32 %v299_v15  ;;  %v547_v21 = vmul.f32 -1.442695, %v299_v15 }
  0x9f   : > { %566 = vtanh.f32 %v383_v18  ;;  %v549_v22 = vmul.f32 -1.442695, %v383_v18 }
  0xa0   : > { %568 = vpow2.f32 %v547_v21 }
  0xa1   : > { %570 = vpow2.f32 %v549_v22 }
  0xa4   : > { %v565_v19 = vpop.eup %564 }
  0xa5   : > { %327 = vrot.lane.b32.xlu0 %v565_v19, %s590_s6  ;;  %v567_v20 = vpop.eup %566 }
  0xa6   : > { %v569_v23 = vpop.eup %568 }
  0xa7   : > { %v303_v24 = vadd.f32 1.0, %v569_v23  ;;  %v571_v25 = vpop.eup %570 }
  0xa8   : > { %v387_v26 = vadd.f32 1.0, %v571_v25 }
  0xa9   : > { %572 = vrcp.f32 %v303_v24  ;;  %v315_v35 = vand.u32 2147483648, %v303_v24  ;;  %vm309_vm3 = vweird.f32 %v303_v24  ;;  %v313_v36 = vand.u32 2147483647, %v303_v24 }
  0xaa   : > { %574 = vrcp.f32 %v387_v26  ;;  %vm393_vm6 = vweird.f32 %v387_v26  ;;  %v399_v41 = vand.u32 2147483648, %v387_v26  ;;  %v397_v44 = vand.u32 2147483647, %v387_v26 }
  0xab   : > { %v316_v39 = vor.u32 1.1754944e-38, %v315_v35  ;;  %vm314_vm5 = vcmp.eq.f32.partialorder %v313_v36, 8.507059e+37 }
  0xac   : > { %v400_v46 = vor.u32 1.1754944e-38, %v399_v41  ;;  %vm398_vm9 = vcmp.eq.f32.partialorder %v397_v44, 8.507059e+37 }
  0xad   : > { %411 = vrot.lane.b32.xlu0 %v567_v20, %s590_s6 }
  0xaf   : > { %v573_v27 = vpop.eup %572 }
  0xb0   : > { %v305_v28 = vmul.f32 %v573_v27, %v303_v24  ;;  %v575_v30 = vpop.eup %574  ;;  %vm310_vm2 = vweird.f32 %v573_v27 }
  0xb1   : > { %v389_v32 = vmul.f32 %v575_v30, %v387_v26  ;;  %vm311_vm4 = vmor %vm309_vm3, %vm310_vm2  ;;  %vm394_vm7 = vweird.f32 %v575_v30 }
  0xb2   : > { %v306_v29 = vsub.f32 1.0, %v305_v28  ;;  %vm395_vm8 = vmor %vm393_vm6, %vm394_vm7 }
  0xb3   : > { %v390_v34 = vsub.f32 1.0, %v389_v32 }
  0xb4   : > { %v307_v31 = vmul.f32 %v573_v27, %v306_v29 }
  0xb5   : > { %v391_v38 = vmul.f32 %v575_v30, %v390_v34 }
  0xb6   : > { %v308_v33 = vadd.f32 %v573_v27, %v307_v31 }
  0xb7   : > { %v392_v43 = vadd.f32 %v575_v30, %v391_v38 }
  0xb8   : > { %v312_v37 = vsel %vm311_vm4, %v573_v27, %v308_v33 }
  0xb9   : > { %v317_v40 = vsel %vm314_vm5, %v316_v39, %v312_v37  ;;  %v396_v47 = vsel %vm395_vm8, %v575_v30, %v392_v43 }
  0xba   : > { %v401_v48 = vsel %vm398_vm9, %v400_v46, %v396_v47  ;;  %v325_v52 = vmul.f32 %v323_v51, %v317_v40 }
  0xbb   : > { %v409_v56 = vmul.f32 %v407_v55, %v401_v48 }
 0x117   : > { %v328_v42 = vpop.permute.xlu0 %327 }
 0x118   : > { %v330_v45 = vmul.f32 %v328_v42, %v317_v40 }
 0x11a   : > { %332 = vrot.lane.b32.xlu2 %v330_v45, %s589_s27 }
 0x11f   : > { %v412_v49 = vpop.permute.xlu0 %411 }
 0x120   : > { %v414_v50 = vmul.f32 %v412_v49, %v401_v48 }
 0x122   : > { %416 = vrot.lane.b32.xlu2 %v414_v50, %s589_s27 }
 0x174   : > { %v333_v53 = vpop.permute.xlu2 %332 }
 0x175   : > { %v335_v54 = vadd.f32 %v333_v53, %v325_v52 }
 0x177   : > { %576 = vtanh.f32 %v335_v54  ;;  %343 = vrot.lane.b32.xlu2 %v335_v54, %s591_s25 }
 0x17c   : > { %v417_v57 = vpop.permute.xlu2 %416 }
 0x17d   : > { %v577_v58 = vpop.eup %576  ;;  %v419_v59 = vadd.f32 %v417_v57, %v409_v56 }
 0x17e   : > { %338 = vrot.lane.b32.xlu0 %v577_v58, %s590_s6 }
 0x17f   : > { %578 = vtanh.f32 %v419_v59 }
 0x185   : > { %v579_v60 = vpop.eup %578 }
 0x186   : > { %422 = vrot.lane.b32.xlu1 %v579_v60, %s590_s6 }
 0x18e   : > { %427 = vrot.lane.b32.xlu1 %v419_v59, %s591_s25 }
 0x1d1   : > { %v344_v61 = vpop.permute.xlu2 %343 }
 0x1d2   : > { %347 = vst.msk [vmem:[#allocation3] sm:$0x3] %vm346_vm10, %v344_v61 }
 0x1f0   : > { %v339_v62 = vpop.permute.xlu0 %338 }
 0x1f1   : > { %v341_v63 = vmul.f32 %v339_v62, %v317_v40 }
 0x1f3   : > { %349 = vrot.lane.b32.xlu0 %v341_v63, %s589_s27 }
 0x1f8   : > { %v423_v0 = vpop.permute.xlu1 %422 }
 0x1f9   : > { %v425_v1 = vmul.f32 %v423_v0, %v401_v48 }
 0x1fb   : > { %432 = vrot.lane.b32.xlu2 %v425_v1, %s589_s27 }
 0x200   : > { %v428_v2 = vpop.permute.xlu1 %427 }
 0x201   : > { %430 = vst.msk [vmem:[#allocation5] sm:$0x3] %vm346_vm10, %v428_v2 }
 0x255   : > { %v433_v3 = vpop.permute.xlu2 %432 }
 0x256   : > { %435 = vst.msk [vmem:[#allocation4] sm:$0x3] %vm346_vm10, %v433_v3 }
 0x257   : > { %436 = vst.msk [vmem:[%s648_s10] sm:$0x3] %vm346_vm10, %v433_v3 }
 0x265   : > { %v350_v4 = vpop.permute.xlu0 %349 }
 0x266   : > { %352 = vst.msk [vmem:[#allocation2] sm:$0x3] %vm346_vm10, %v350_v4 }
 0x267   : > { %353 = vst.msk [vmem:[%s643_s7] sm:$0x3] %vm346_vm10, %v350_v4 }
 0x268 PF: > { %s16_s18 = sadd.s32 1, %s586_s18  }
 0x269   : > { %p13_p6 = scmp.ge.s32.totalorder %s16_s18, 10  }
 0x26b   :  { %15 = sbr.rel (!%p13_p6) target bundleno = 1 (0x1), region = 85 }

// kernel: model_forward.5
= control target key start
LH: loop header
LB: loop body
LE: loop exit
PB: predicated region body
PF: predicated region fallthrough
CT: control target
= control target key end

     0   :  { %s854_s0 = inlined_call_operand.vmem [shape: f32[8,2,32], index: 0, kind: input, shape index: {}]   ;;  %s855_s1 = inlined_call_operand.vmem [shape: f32[8,2,32], index: 1, kind: input, shape index: {}]   ;;  %s856_s2 = inlined_call_operand.vmem [shape: f32[32,1], index: 2, kind: input, shape index: {}]   ;;  %s857_s3 = inlined_call_operand.vmem [shape: f32[32,1], index: 3, kind: input, shape index: {}]   ;;  %s858_s4 = inlined_call_operand.vmem [shape: f32[32,16], index: 4, kind: input, shape index: {}]   ;;  %s859_s5 = inlined_call_operand.vmem [shape: f32[32,16], index: 5, kind: input, shape index: {}]   ;;  %s860_s6 = inlined_call_operand.vmem [shape: f32[1,16], index: 6, kind: input, shape index: {}]   ;;  %s861_s7 = inlined_call_operand.vmem [shape: f32[16,4], index: 7, kind: input, shape index: {}]   ;;  %s862_s8 = inlined_call_operand.vmem [shape: f32[1,4], index: 8, kind: input, shape index: {}]   ;;  %s863_s9 = inlined_call_operand.hbm [shape: f32[2,4], index: 9, kind: output, shape index: {}]  }
   0x1   :  { %v72_v0 = vld [vmem:[%s857_s3 + $0x18] sm:$0xff]  ;;  %v71_v2 = vld [vmem:[%s857_s3 + $0x10] sm:$0xff]  ;;  %v70_v4 = vld [vmem:[%s857_s3 + $0x8] sm:$0xff] }
   0x2   :  { %v68_v1 = vld [vmem:[%s856_s2 + $0x18] sm:$0xff]  ;;  %115 = vmatpush.msra.mxu0 %v72_v0  ;;  %v67_v3 = vld [vmem:[%s856_s2 + $0x10] sm:$0xff]  ;;  %v66_v5 = vld [vmem:[%s856_s2 + $0x8] sm:$0xff] }
   0x3   :  { %167 = vmatpush.msra.mxu1 %v68_v1  ;;  %v69_v6 = vld [vmem:[%s857_s3] sm:$0xff] }
   0x4   :  { %116 = vmatpush.msra.mxu0 %v71_v2  ;;  %v65_v7 = vld [vmem:[%s856_s2] sm:$0xff] }
   0x5   :  { %168 = vmatpush.msra.mxu1 %v67_v3  ;;  %v668_v8 = vld [vmem:[%s855_s1] sm:$0x3]  ;;  %v673_v9 = vld [vmem:[%s855_s1 + $0x2] sm:$0x3]  ;;  %v678_v10 = vld [vmem:[%s855_s1 + $0x4] sm:$0x3] }
   0x6   :  { %117 = vmatpush.msra.mxu0 %v70_v4  ;;  %v683_v11 = vld [vmem:[%s855_s1 + $0x6] sm:$0x3]  ;;  %512 = vtanh.f32 %v668_v8 }
   0x7   :  { %169 = vmatpush.msra.mxu1 %v66_v5  ;;  %514 = vtanh.f32 %v673_v9 }
   0x8   :  { %118 = vmatpush.msra.mxu0 %v69_v6 }
   0x9   :  { %170 = vmatpush.msra.mxu1 %v65_v7 }
   0xa   :  { %14 = vsyncpa [#allocation3], 0  ;;  %516 = vtanh.f32 %v678_v10  ;;  %v691_v12 = vld [vmem:[%s854_s0] sm:$0x3]  ;;  %v697_v13 = vld [vmem:[%s854_s0 + $0x2] sm:$0x3] }
   0xb   :  { %518 = vtanh.f32 %v683_v11  ;;  %v702_v14 = vld [vmem:[%s855_s1 + $0x8] sm:$0x3]  ;;  %v708_v16 = vld [vmem:[%s855_s1 + $0xa] sm:$0x3]  ;;  %v714_v18 = vld [vmem:[%s855_s1 + $0xc] sm:$0x3] }
   0xc   :  { %v513_v15 = vpop.eup %512  ;;  %520 = vtanh.f32 %v691_v12  ;;  %v719_v20 = vld [vmem:[%s854_s0 + $0x4] sm:$0x3]  ;;  %v725_v22 = vld [vmem:[%s854_s0 + $0x6] sm:$0x3]  ;;  %v731_v23 = vld [vmem:[%s855_s1 + $0xe] sm:$0x3] }
   0xd   :  { %v515_v17 = vpop.eup %514  ;;  %522 = vtanh.f32 %v697_v13  ;;  %81 = vst [vmem:[#allocation1] ss:$4 sm:$0xff] %v513_v15  ;;  %vm98_vm0 = vcmask 261120   ;;  %v741_v32 = vld [vmem:[%s854_s0 + $0x8] sm:$0x3]  ;;  %v588_v46 = vmov 0  }
   0xe   :  { %83 = vst [vmem:[#allocation1 + $0x1] ss:$4 sm:$0xff] %v515_v17  ;;  %524 = vtanh.f32 %v702_v14  ;;  %v746_v34 = vld [vmem:[%s854_s0 + $0xa] sm:$0x3]  ;;  %v751_v35 = vld [vmem:[%s854_s0 + $0xc] sm:$0x3]  ;;  %509 = vset.pattern.permute.xlu2 %v588_v46  ;;  %508 = vset.pattern.permute.xlu1 %v588_v46 }
   0xf   :  { %526 = vtanh.f32 %v708_v16  ;;  %v756_v36 = vld [vmem:[%s854_s0 + $0xe] sm:$0x3]  ;;  %507 = vset.pattern.permute.xlu0 %v588_v46  ;;  %vm192_vm1 = vcmask 1024   ;;  %vm349_vm6 = vcmask 254976   ;;  %vm455_vm7 = vcmask 130048   ;;  %s590_s30 = smov [#allocation2]  }
  0x10   :  { %v517_v19 = vpop.eup %516  ;;  %528 = vtanh.f32 %v714_v18  ;;  %s486_s2 = sshll.u32 %s590_s30, 4  ;;  %vm479_vm8 = vcmask 25600   ;;  %s487_s2 = int_to_ptr.vmem [resolvable:$true] %s486_s2 }
  0x11   :  { %v519_v21 = vpop.eup %518  ;;  %85 = vst [vmem:[#allocation1 + $0x2] ss:$4 sm:$0xff] %v517_v19  ;;  %530 = vtanh.f32 %v719_v20 }
  0x12   :  { %87 = vst [vmem:[#allocation1 + $0x3] ss:$4 sm:$0xff] %v519_v21  ;;  %v521_v24 = vpop.eup %520  ;;  %532 = vtanh.f32 %v725_v22 }
  0x13   :  { %v523_v25 = vpop.eup %522  ;;  %534 = vtanh.f32 %v731_v23 }
  0x14   :  { %v525_v26 = vpop.eup %524  ;;  %536 = vtanh.f32 %v741_v32 }
  0x15   :  { %v527_v27 = vpop.eup %526  ;;  %89 = vst [vmem:[#allocation1 + $0x20] ss:$4 sm:$0xff] %v525_v26  ;;  %538 = vtanh.f32 %v746_v34 }
  0x16   :  { %v529_v28 = vpop.eup %528  ;;  %91 = vst [vmem:[#allocation1 + $0x21] ss:$4 sm:$0xff] %v527_v27  ;;  %540 = vtanh.f32 %v751_v35 }
  0x17   :  { %v531_v29 = vpop.eup %530  ;;  %93 = vst [vmem:[#allocation1 + $0x22] ss:$4 sm:$0xff] %v529_v28  ;;  %542 = vtanh.f32 %v756_v36 }
  0x18   :  { %v533_v31 = vpop.eup %532 }
  0x19   :  { %v96_v30 = vld.sshfl [vmem:[#allocation1] sm:$0xff pattern:$0x73625140]  ;;  %v535_v33 = vpop.eup %534 }
  0x1a   :  { %497 = vmatmul.msk.f32.vlgmr.msra.gmra.mxu0 %vm98_vm0, %v96_v30  ;;  %134 = vst [vmem:[#allocation1] ss:$4 sm:$0xff] %v521_v24  ;;  %v537_v37 = vpop.eup %536 }
  0x1b   :  { %136 = vst [vmem:[#allocation1 + $0x1] ss:$4 sm:$0xff] %v523_v25  ;;  %v539_v38 = vpop.eup %538 }
  0x1c   :  { %138 = vst [vmem:[#allocation1 + $0x2] ss:$4 sm:$0xff] %v531_v29  ;;  %v541_v40 = vpop.eup %540 }
  0x1d   :  { %140 = vst [vmem:[#allocation1 + $0x3] ss:$4 sm:$0xff] %v533_v31  ;;  %v543_v42 = vpop.eup %542 }
  0x1e   :  { %95 = vst [vmem:[#allocation1 + $0x23] ss:$4 sm:$0xff] %v535_v33 }
  0x24   :  { %v149_v39 = vld.sshfl [vmem:[#allocation1] sm:$0xff pattern:$0x73625140] }
  0x25   :  { %499 = vmatmul.msk.f32.vlgmr.msra.gmra.mxu1 %vm98_vm0, %v149_v39  ;;  %v97_v41 = vld.sshfl [vmem:[#allocation1 + $0x20] sm:$0xff pattern:$0x73625140] }
  0x26   :  { %498 = vmatmul.msk.f32.gmra.mxu0 %vm98_vm0, %v97_v41  ;;  %142 = vst [vmem:[#allocation1 + $0x20] ss:$4 sm:$0xff] %v537_v37 }
  0x27   :  { %144 = vst [vmem:[#allocation1 + $0x21] ss:$4 sm:$0xff] %v539_v38 }
  0x28   :  { %146 = vst [vmem:[#allocation1 + $0x22] ss:$4 sm:$0xff] %v541_v40 }
  0x29   :  { %148 = vst [vmem:[#allocation1 + $0x23] ss:$4 sm:$0xff] %v543_v42 }
  0x30   :  { %v150_v43 = vld.sshfl [vmem:[#allocation1 + $0x20] sm:$0xff pattern:$0x73625140] }
  0x31   :  { %500 = vmatmul.msk.f32.gmra.mxu1 %vm98_vm0, %v150_v43 }
  0x97   :  { %v120_v44 = vpop.f32.mrf.mxu0 }
  0xa2   :  { %v172_v45 = vpop.f32.mrf.mxu1 }
  0xa3   :  { %v173_v47 = vadd.f32 %v172_v45, %v120_v44  ;;  %v123_v48 = vpop.f32.mrf.mxu0 }
  0xa5   :  { %v180_v49 = vrot.slane %v173_v47, 2  ;;  %v181_v50 = vrot.slane %v173_v47, 4  ;;  %v182_v52 = vrot.slane %v173_v47, 6  ;;  %v193_v58 = vsel %vm192_vm1, %v173_v47, -inf }
  0xa7   :  { %v194_v59 = vsel %vm192_vm1, %v180_v49, -inf  ;;  %v195_v60 = vsel %vm192_vm1, %v181_v50, -inf  ;;  %v196_v61 = vsel %vm192_vm1, %v182_v52, -inf }
  0xae   :  { %v175_v51 = vpop.f32.mrf.mxu1 }
  0xaf   :  { %v176_v53 = vadd.f32 %v175_v51, %v123_v48 }
  0xb1   :  { %v183_v54 = vrot.slane %v176_v53, 2  ;;  %v184_v55 = vrot.slane %v176_v53, 4  ;;  %v185_v56 = vrot.slane %v176_v53, 6  ;;  %v197_v57 = vsel %vm192_vm1, %v176_v53, -inf }
  0xb2   :  { %v198_v1 = vmax.f32 %v193_v58, %v197_v57 }
  0xb3   :  { %v199_v62 = vsel %vm192_vm1, %v183_v54, -inf  ;;  %v201_v63 = vsel %vm192_vm1, %v184_v55, -inf  ;;  %v203_v0 = vsel %vm192_vm1, %v185_v56, -inf }
  0xb4   :  { %v200_v2 = vmax.f32 %v194_v59, %v199_v62  ;;  %v202_v3 = vmax.f32 %v195_v60, %v201_v63  ;;  %v204_v4 = vmax.f32 %v196_v61, %v203_v0 }
  0xb6   :  { %v205_v5 = vmax.f32 %v198_v1, %v200_v2  ;;  %v206_v6 = vmax.f32 %v202_v3, %v204_v4 }
  0xb8   :  { %v207_v7 = vmax.f32 %v205_v5, %v206_v6 }
  0xba   :  { %v208_v15 = vsub.f32 %v173_v47, %v207_v7  ;;  %v209_v17 = vsub.f32 %v180_v49, %v207_v7  ;;  %v210_v19 = vsub.f32 %v181_v50, %v207_v7  ;;  %v211_v21 = vsub.f32 %v182_v52, %v207_v7 }
  0xbb   :  { %v212_v25 = vsub.f32 %v176_v53, %v207_v7  ;;  %v213_v28 = vsub.f32 %v183_v54, %v207_v7  ;;  %v214_v30 = vsub.f32 %v184_v55, %v207_v7  ;;  %v215_v33 = vsub.f32 %v185_v56, %v207_v7 }
  0xbc   :  { %v216_v24 = vmul.f32 1.442695, %v208_v15  ;;  %v218_v26 = vmul.f32 1.442695, %v209_v17  ;;  %v220_v27 = vmul.f32 1.442695, %v210_v19 }
  0xbd   :  { %v222_v29 = vmul.f32 1.442695, %v211_v21  ;;  %v224_v31 = vmul.f32 1.442695, %v212_v25  ;;  %v226_v37 = vmul.f32 1.442695, %v213_v28 }
  0xbe   :  { %544 = vpow2.f32 %v216_v24  ;;  %v228_v38 = vmul.f32 1.442695, %v214_v30  ;;  %v230_v41 = vmul.f32 1.442695, %v215_v33  ;;  %v393_v30 = vld [vmem:[%s858_s4 + $0x18] sm:$0xff]  ;;  %v392_v33 = vld [vmem:[%s858_s4 + $0x10] sm:$0xff] }
  0xbf   :  { %546 = vpow2.f32 %v218_v26  ;;  %436 = vmatpush.msra.mxu3 %v393_v30 }
  0xc0   :  { %548 = vpow2.f32 %v220_v27 }
  0xc1   :  { %550 = vpow2.f32 %v222_v29  ;;  %v397_v29 = vld [vmem:[%s859_s5 + $0x18] sm:$0xff]  ;;  %437 = vmatpush.msra.mxu3 %v392_v33 }
  0xc2   :  { %552 = vpow2.f32 %v224_v31  ;;  %v396_v31 = vld [vmem:[%s859_s5 + $0x10] sm:$0xff]  ;;  %413 = vmatpush.msra.mxu2 %v397_v29 }
  0xc3   :  { %554 = vpow2.f32 %v226_v37  ;;  %v395_v37 = vld [vmem:[%s859_s5 + $0x8] sm:$0xff] }
  0xc4   :  { %v545_v39 = vpop.eup %544  ;;  %556 = vpow2.f32 %v228_v38  ;;  %v391_v38 = vld [vmem:[%s858_s4 + $0x8] sm:$0xff]  ;;  %414 = vmatpush.msra.mxu2 %v396_v31 }
  0xc5   :  { %v547_v40 = vpop.eup %546  ;;  %v232_v42 = vsel %vm192_vm1, %v545_v39, 0.0  ;;  %558 = vpow2.f32 %v230_v41  ;;  %438 = vmatpush.msra.mxu3 %v391_v38  ;;  %v589_v41 = vmov 269488144  }
  0xc6   :  { %v549_v43 = vpop.eup %548  ;;  %v233_v44 = vsel %vm192_vm1, %v547_v40, 0.0  ;;  %415 = vmatpush.msra.mxu2 %v395_v37 }
  0xc7   :  { %v551_v45 = vpop.eup %550  ;;  %v234_v46 = vadd.f32 %v233_v44, %v232_v42  ;;  %v235_v47 = vsel %vm192_vm1, %v549_v43, 0.0  ;;  %v275_v42 = vunpack.c.l.s4 %v589_v41 }
  0xc8   :  { %v553_v48 = vpop.eup %552  ;;  %v237_v50 = vsel %vm192_vm1, %v551_v45, 0.0 }
  0xc9   :  { %v236_v49 = vadd.f32 %v235_v47, %v234_v46  ;;  %v555_v51 = vpop.eup %554  ;;  %v239_v53 = vsel %vm192_vm1, %v553_v48, 0.0  ;;  %v276_v47 = vunpack.c.0.s8 %v275_v42 }
  0xca   :  { %v557_v54 = vpop.eup %556  ;;  %v241_v56 = vsel %vm192_vm1, %v555_v51, 0.0 }
  0xcb   :  { %v238_v52 = vadd.f32 %v237_v50, %v236_v49  ;;  %v559_v57 = vpop.eup %558  ;;  %v243_v59 = vsel %vm192_vm1, %v557_v54, 0.0 }
  0xcc   :  { %v245_v61 = vsel %vm192_vm1, %v559_v57, 0.0 }
  0xcd   :  { %v240_v55 = vadd.f32 %v239_v53, %v238_v52 }
  0xcf   :  { %v242_v58 = vadd.f32 %v241_v56, %v240_v55 }
  0xd1   :  { %v244_v60 = vadd.f32 %v243_v59, %v242_v58 }
  0xd3   :  { %v246_v62 = vadd.f32 %v245_v61, %v244_v60 }
  0xd5   :  { %560 = vrcp.f32 %v246_v62  ;;  %v258_v2 = vand.u32 2147483648, %v246_v62  ;;  %v256_v4 = vand.u32 2147483647, %v246_v62  ;;  %vm252_vm3 = vweird.f32 %v246_v62 }
  0xd7   :  { %v259_v6 = vor.u32 1.1754944e-38, %v258_v2  ;;  %vm257_vm5 = vcmp.eq.f32.partialorder %v256_v4, 8.507059e+37 }
  0xdb   :  { %v561_v63 = vpop.eup %560 }
  0xdc   :  { %v248_v0 = vmul.f32 %v561_v63, %v246_v62  ;;  %vm253_vm2 = vweird.f32 %v561_v63 }
  0xdd   :  { %vm254_vm4 = vmor %vm252_vm3, %vm253_vm2 }
  0xde   :  { %v249_v1 = vsub.f32 1.0, %v248_v0 }
  0xe0   :  { %v250_v3 = vmul.f32 %v561_v63, %v249_v1 }
  0xe2   :  { %v251_v5 = vadd.f32 %v561_v63, %v250_v3 }
  0xe4   :  { %v255_v7 = vsel %vm254_vm4, %v561_v63, %v251_v5 }
  0xe5   :  { %v260_v15 = vsel %vm257_vm5, %v259_v6, %v255_v7 }
  0xe6   :  { %v265_v17 = vmul.f32 %v553_v48, %v260_v15  ;;  %v263_v19 = vmul.f32 %v549_v43, %v260_v15  ;;  %v261_v21 = vmul.f32 %v545_v39, %v260_v15  ;;  %v266_v24 = vmul.f32 %v555_v51, %v260_v15  ;;  %v394_v39 = vld [vmem:[%s859_s5] sm:$0xff]  ;;  %v450_v43 = vld [vmem:[%s861_s7 + $0x8] sm:$0xff] }
  0xe7   :  { %v264_v25 = vmul.f32 %v551_v45, %v260_v15  ;;  %v262_v26 = vmul.f32 %v547_v40, %v260_v15  ;;  %v268_v27 = vmul.f32 %v559_v57, %v260_v15  ;;  %v267_v28 = vmul.f32 %v557_v54, %v260_v15  ;;  %v390_v40 = vld [vmem:[%s858_s4] sm:$0xff]  ;;  %416 = vmatpush.msra.mxu2 %v394_v39 }
  0xe8   :  { %307 = vperm.xlu2 %509, %v265_v17   ;;  %289 = vperm.xlu1 %508, %v263_v19  }
  0xe9   :  { %271 = vperm.xlu0 %507, %v261_v21   ;;  %439 = vmatpush.msra.mxu3 %v390_v40 }
  0xea   :  { %473 = vmatpush.msrb.mxu2 %v450_v43 }
  0xf0   :  { %316 = vperm.xlu2 %509, %v266_v24   ;;  %298 = vperm.xlu1 %508, %v264_v25  }
  0xf1   :  { %280 = vperm.xlu0 %507, %v262_v26  }
  0xf8   :  { %334 = vperm.xlu1 %508, %v268_v27  }
  0xf9   :  { %325 = vperm.xlu0 %507, %v267_v28  }
 0x142   :  { %v308_v44 = vpop.permute.xlu2 %307 }
 0x143   :  { %v313_v57 = vperm.slane %v308_v44, %v276_v47 }
 0x14a   :  { %v317_v54 = vpop.permute.xlu2 %316 }
 0x14b   :  { %v322_v62 = vperm.slane %v317_v54, %v276_v47 }
 0x14d   :  { %v346_v6 = vmul.f32 %v322_v62, %v746_v34 }
 0x14f   :  { %v359_v29 = vsel %vm349_vm6, %v346_v6, 0.0 }
 0x15a   :  { %v290_v45 = vpop.permute.xlu1 %289 }
 0x15b   :  { %v272_v46 = vpop.permute.xlu0 %271  ;;  %v295_v49 = vperm.slane %v290_v45, %v276_v47 }
 0x15c   :  { %v277_v48 = vperm.slane %v272_v46, %v276_v47 }
 0x15d   :  { %v343_v58 = vmul.f32 %v295_v49, %v719_v20  ;;  %v368_v59 = vmul.f32 %v295_v49, %v678_v10  ;;  %v345_v10 = vmul.f32 %v313_v57, %v741_v32 }
 0x15e   :  { %v341_v51 = vmul.f32 %v277_v48, %v691_v12  ;;  %v366_v52 = vmul.f32 %v277_v48, %v668_v8 }
 0x15f   :  { %v377_v4 = vsel %vm349_vm6, %v368_v59, 0.0  ;;  %v357_v25 = vsel %vm349_vm6, %v345_v10, 0.0 }
 0x160   :  { %v350_v63 = vsel %vm349_vm6, %v341_v51, 0.0  ;;  %v374_v12 = vsel %vm349_vm6, %v366_v52, 0.0  ;;  %v511_v51 = vld [vmem:[%s862_s8] ss:$0 sm:$0xff] }
 0x162   :  { %v299_v50 = vpop.permute.xlu1 %298 }
 0x163   :  { %v281_v53 = vpop.permute.xlu0 %280  ;;  %v304_v55 = vperm.slane %v299_v50, %v276_v47 }
 0x164   :  { %v286_v56 = vperm.slane %v281_v53, %v276_v47 }
 0x165   :  { %v344_v8 = vmul.f32 %v304_v55, %v725_v22  ;;  %v369_v0 = vmul.f32 %v304_v55, %v683_v11  ;;  %v371_v22 = vmul.f32 %v322_v62, %v708_v16 }
 0x166   :  { %v342_v60 = vmul.f32 %v286_v56, %v697_v13  ;;  %v367_v61 = vmul.f32 %v286_v56, %v673_v9  ;;  %v370_v13 = vmul.f32 %v313_v57, %v702_v14  ;;  %v353_v9 = vsel %vm349_vm6, %v343_v58, 0.0 }
 0x167   :  { %v355_v17 = vsel %vm349_vm6, %v344_v8, 0.0  ;;  %v379_v19 = vsel %vm349_vm6, %v369_v0, 0.0  ;;  %v383_v30 = vsel %vm349_vm6, %v371_v22, 0.0 }
 0x168   :  { %v351_v1 = vsel %vm349_vm6, %v342_v60, 0.0  ;;  %v375_v2 = vsel %vm349_vm6, %v367_v61, 0.0  ;;  %v381_v26 = vsel %vm349_vm6, %v370_v13, 0.0 }
 0x169   :  { %v352_v20 = vadd.f32 %v351_v1, %v350_v63  ;;  %v376_v3 = vadd.f32 %v375_v2, %v374_v12 }
 0x16a   :  { %v335_v5 = vpop.permute.xlu1 %334 }
 0x16b   :  { %v354_v11 = vadd.f32 %v353_v9, %v352_v20  ;;  %v378_v7 = vadd.f32 %v377_v4, %v376_v3  ;;  %v326_v15 = vpop.permute.xlu0 %325  ;;  %v340_v21 = vperm.slane %v335_v5, %v276_v47 }
 0x16c   :  { %v331_v32 = vperm.slane %v326_v15, %v276_v47 }
 0x16d   :  { %v356_v24 = vadd.f32 %v355_v17, %v354_v11  ;;  %v380_v14 = vadd.f32 %v379_v19, %v378_v7  ;;  %v348_v31 = vmul.f32 %v340_v21, %v756_v36  ;;  %v373_v33 = vmul.f32 %v340_v21, %v731_v23  ;;  %v449_v23 = vld [vmem:[%s861_s7] sm:$0xff]  ;;  %s488_s7 = sshll.u32 %s863_s9, 4  ;;  %s489_s7 = int_to_ptr.hbm [resolvable:$true] %s488_s7 }
 0x16e   :  { %v347_v27 = vmul.f32 %v331_v32, %v751_v35  ;;  %v372_v34 = vmul.f32 %v331_v32, %v714_v18  ;;  %474 = vmatpush.msrb.mxu2 %v449_v23  ;;  %v510_v36 = vld [vmem:[%s860_s6] ss:$0 sm:$0xff] }
 0x16f   :  { %v358_v16 = vadd.f32 %v357_v25, %v356_v24  ;;  %v382_v28 = vadd.f32 %v381_v26, %v380_v14  ;;  %v363_v18 = vsel %vm349_vm6, %v348_v31, 0.0  ;;  %v387_v42 = vsel %vm349_vm6, %v373_v33, 0.0 }
 0x170   :  { %v361_v39 = vsel %vm349_vm6, %v347_v27, 0.0  ;;  %v385_v40 = vsel %vm349_vm6, %v372_v34, 0.0 }
 0x171   :  { %v360_v37 = vadd.f32 %v359_v29, %v358_v16  ;;  %v384_v38 = vadd.f32 %v383_v30, %v382_v28 }
 0x173   :  { %v362_v41 = vadd.f32 %v361_v39, %v360_v37  ;;  %v386_v35 = vadd.f32 %v385_v40, %v384_v38 }
 0x175   :  { %v388_v43 = vadd.f32 %v387_v42, %v386_v35  ;;  %v364_v44 = vadd.f32 %v363_v18, %v362_v41 }
 0x177   :  { %v389_v45 = vmax.f32 %v388_v43, 0.0  ;;  %v365_v46 = vmax.f32 %v364_v44, 0.0 }
 0x179   :  { %501 = vmatmul.msk.f32.vlgmr.msra.gmra.mxu2 %vm98_vm0, %v389_v45  ;;  %502 = vmatmul.msk.f32.vlgmr.msra.gmra.mxu3 %vm98_vm0, %v365_v46 }
 0x1fc   :  { %v418_v47 = vpop.f32.mrf.mxu2  ;;  %v441_v48 = vpop.f32.mrf.mxu3 }
 0x1fd   :  { %v442_v49 = vadd.f32 %v441_v48, %v418_v47 }
 0x1ff   :  { %v448_v50 = vadd.f32 %v510_v36, %v442_v49 }
 0x201   :  { %503 = vmatmul.msk.f32.vlgmr.msrb.gmra.mxu2 %vm455_vm7, %v448_v50 }
 0x284   :  { %v476_v52 = vpop.f32.mrf.mxu2 }
 0x285   :  { %v477_v53 = vadd.f32 %v511_v51, %v476_v52 }
 0x287   :  { %480 = vst.msk [vmem:[#allocation2] sm:$0x3] %vm479_vm8, %v477_v53 }
 0x288   :  { %491 = dma.vmem_to_hbm [thread:$0]  %s487_s2, 32, %s489_s7, [#allocation3]  }
 0x289   :  { %586 = dma.done.wait [#allocation3], 32  }
 0x28a   :  { %587 = vsyncadd [#allocation3], 4294967264 }
 0x28b   :  { %496 = vsyncpa [#allocation3], 1 }

</bundles_post_ra>
